<compile_context>
chip_gen: v7x
topology: tpu7x:2x2x1
jax: 0.10.0
libtpu: 0.0.40
codegen_flags: <defaults>
</compile_context>

<pallas_src>
import jax
import jax.numpy as jnp
from jax.experimental import pallas as pl
from jax.experimental.pallas import tpu as pltpu

IN_F = 10
HID_F = 1994
OUT_F = 10
TB_LADDER = (1024, 512, 256, 128, 64, 32, 16, 8)  # batch tiles (multiples of 8)


def _round_up(n, m):
    return ((n + m - 1) // m) * m


def _pick_tb(batch):
    for tb in TB_LADDER:
        if batch >= tb:
            return tb
    return TB_LADDER[-1]


def prepare_params(w1, b1, w2, b2):
    """One-time parameter prep (NOT per call).

    PyTorch layout in:  w1 (1994,10), b1 (1994,), w2 (10,1994), b2 (10,)
    Because y is a per-row scalar, forward collapses to
        out = y*y * (x @ Wc + c1) + y * b2
    with Wc = W1.T @ W2.T (10,10) and c1 = b1 @ W2.T (10,).
    Identical math up to fp32 summation order.
    """
    w1f = jnp.asarray(w1, jnp.float32)
    b1f = jnp.asarray(b1, jnp.float32)
    w2f = jnp.asarray(w2, jnp.float32)
    b2f = jnp.asarray(b2, jnp.float32)
    wc = w1f.T @ w2f.T                         # (10, 10)
    c1 = (b1f @ w2f.T).reshape(1, OUT_F)       # (1, 10)
    b2p = b2f.reshape(1, OUT_F)                # (1, 10)
    return wc, c1, b2p


def two_linear_kernel(x_ref, y_ref, wc_ref, c1_ref, b2_ref, out_ref):
    # x: (TB,10)  y: (TB,1)  wc: (10,10)  c1: (1,10)  b2: (1,10)  out: (TB,10)
    x = x_ref[...]
    y = y_ref[...]
    t = jnp.dot(x, wc_ref[...], preferred_element_type=jnp.float32) + c1_ref[...]
    out_ref[...] = ((y * y) * t + y * b2_ref[...]).astype(out_ref.dtype)


@jax.jit
def two_linear(x, y, wc, c1, b2p):
    """Forward matching PyTorch TwoLinear.forward(x, y) for per-row-scalar y.

    x: (B, 10) f32, y: (B, 1) f32.  Params from prepare_params().  Returns (B, 10) f32.
    """
    # TODO(synk): only per-row-scalar y (shape (B, 1)) is supported; an elementwise y
    # of shape (B, 1994)/(B, 10) would need the explicit two-matmul structure instead.
    B = x.shape[0]
    tb = _pick_tb(B)
    b_pad = _round_up(B, tb)
    if b_pad != B:
        x = jnp.pad(x, ((0, b_pad - B), (0, 0)))
        y = jnp.pad(y, ((0, b_pad - B), (0, 0)))

    const = lambda i: (0, 0)
    flops = 2 * b_pad * IN_F * OUT_F + 5 * b_pad * OUT_F
    bytes_accessed = 4 * (b_pad * (IN_F + 1 + OUT_F) + IN_F * OUT_F + 2 * OUT_F)

    out = pl.pallas_call(
        two_linear_kernel,
        out_shape=jax.ShapeDtypeStruct((b_pad, OUT_F), x.dtype),
        grid=(b_pad // tb,),
        in_specs=[
            pl.BlockSpec((tb, IN_F), lambda i: (i, 0)),   # x tile (pipelined)
            pl.BlockSpec((tb, 1), lambda i: (i, 0)),      # y tile (pipelined)
            pl.BlockSpec((IN_F, OUT_F), const),           # Wc  (VMEM-resident)
            pl.BlockSpec((1, OUT_F), const),              # c1  (VMEM-resident)
            pl.BlockSpec((1, OUT_F), const),              # b2  (VMEM-resident)
        ],
        out_specs=pl.BlockSpec((tb, OUT_F), lambda i: (i, 0)),
        compiler_params=pltpu.CompilerParams(
            dimension_semantics=("parallel",)),
        cost_estimate=pl.CostEstimate(
            flops=flops, transcendentals=0, bytes_accessed=bytes_accessed),
    )(x, y, wc, c1, b2p)

    return out[:B]


def init_params(key):
    """Deterministic PyTorch-style init: U(-1/sqrt(fan_in), 1/sqrt(fan_in))."""
    k1, k2, k3, k4 = jax.random.split(key, 4)
    bound1 = 1.0 / jnp.sqrt(10.0)
    bound2 = 1.0 / jnp.sqrt(1994.0)
    w1 = jax.random.uniform(k1, (HID_F, IN_F), jnp.float32, -bound1, bound1)
    b1 = jax.random.uniform(k2, (HID_F,), jnp.float32, -bound1, bound1)
    w2 = jax.random.uniform(k3, (OUT_F, HID_F), jnp.float32, -bound2, bound2)
    b2 = jax.random.uniform(k4, (OUT_F,), jnp.float32, -bound2, bound2)
    return w1, b1, w2, b2


if __name__ == "__main__":
    key = jax.random.PRNGKey(0)
    kx, ky, kp = jax.random.split(key, 3)

    B = 8
    x = jax.random.normal(kx, (B, IN_F), jnp.float32)
    y = jax.random.normal(ky, (B, 1), jnp.float32)   # per-row scalar broadcast
    w1, b1, w2, b2 = init_params(kp)

    # One-time param prep (algebraic collapse); reused for every forward call.
    params = prepare_params(w1, b1, w2, b2)

    out = two_linear(x, y, *params)
    out = jax.block_until_ready(out)

    # Pure-JAX reference using the original two-matmul structure and PyTorch layout.
    ref_h = (x @ w1.T + b1) * y
    ref = (ref_h @ w2.T + b2) * y
    assert out.shape == (B, OUT_F)
    assert jnp.allclose(out, ref, atol=1e-4, rtol=1e-4), float(
        jnp.max(jnp.abs(out - ref)))

    print("KERNEL_OK")
</pallas_src>

<mosaic_0001>
module attributes {stable_mosaic.version = 11 : i64} {
  func.func @two_linear_kernel(%arg0: i32, %arg1: memref<8x10xf32, #tpu.memory_space<vmem>>, %arg2: memref<8x1xf32, #tpu.memory_space<vmem>>, %arg3: memref<10x10xf32, #tpu.memory_space<vmem>>, %arg4: memref<1x10xf32, #tpu.memory_space<vmem>>, %arg5: memref<1x10xf32, #tpu.memory_space<vmem>>, %arg6: memref<8x10xf32, #tpu.memory_space<vmem>>) attributes {dimension_semantics = [#tpu.dimension_semantics<parallel>], iteration_bounds = array<i64: 1>, scalar_prefetch = 0 : i64, scratch_operands = 0 : i64, tpu.core_type = #tpu.core_type<tc>, window_params = [{transform_indices = @transform_0, window_bounds = array<i64: 8, 10>}, {transform_indices = @transform_1, window_bounds = array<i64: 8, 1>}, {pipeline_mode = #tpu.pipeline_mode<synchronous>, transform_indices = @transform_2, window_bounds = array<i64: 10, 10>}, {pipeline_mode = #tpu.pipeline_mode<synchronous>, transform_indices = @transform_3, window_bounds = array<i64: 1, 10>}, {pipeline_mode = #tpu.pipeline_mode<synchronous>, transform_indices = @transform_4, window_bounds = array<i64: 1, 10>}, {transform_indices = @transform_5, window_bounds = array<i64: 8, 10>}]} {
    %c0 = arith.constant 0 : index
    %c0_0 = arith.constant 0 : index
    %0 = vector.load %arg1[%c0, %c0_0] : memref<8x10xf32, #tpu.memory_space<vmem>>, vector<8x10xf32>
    %c0_1 = arith.constant 0 : index
    %c0_2 = arith.constant 0 : index
    %1 = vector.load %arg2[%c0_1, %c0_2] : memref<8x1xf32, #tpu.memory_space<vmem>>, vector<8x1xf32>
    %c0_3 = arith.constant 0 : index
    %c0_4 = arith.constant 0 : index
    %2 = vector.load %arg3[%c0_3, %c0_4] : memref<10x10xf32, #tpu.memory_space<vmem>>, vector<10x10xf32>
    %cst = arith.constant dense<0.000000e+00> : vector<8x10xf32>
    %3 = tpu.matmul %0, %2, %cst {dimension_numbers = #tpu.dot_dimension_numbers<[1], [0], [0], [1], [0, 0, 1, 1], [], []>} : vector<8x10xf32>, vector<10x10xf32>, vector<8x10xf32> -> vector<8x10xf32>
    %c0_5 = arith.constant 0 : index
    %c0_6 = arith.constant 0 : index
    %4 = vector.load %arg4[%c0_5, %c0_6] : memref<1x10xf32, #tpu.memory_space<vmem>>, vector<1x10xf32>
    %5 = vector.broadcast %4 : vector<1x10xf32> to vector<8x10xf32>
    %6 = arith.addf %3, %5 : vector<8x10xf32>
    %7 = arith.mulf %1, %1 : vector<8x1xf32>
    %8 = vector.broadcast %7 : vector<8x1xf32> to vector<8x10xf32>
    %9 = arith.mulf %8, %6 : vector<8x10xf32>
    %c0_7 = arith.constant 0 : index
    %c0_8 = arith.constant 0 : index
    %10 = vector.load %arg5[%c0_7, %c0_8] : memref<1x10xf32, #tpu.memory_space<vmem>>, vector<1x10xf32>
    %11 = vector.broadcast %1 : vector<8x1xf32> to vector<8x10xf32>
    %12 = vector.broadcast %10 : vector<1x10xf32> to vector<8x10xf32>
    %13 = arith.mulf %11, %12 : vector<8x10xf32>
    %14 = arith.addf %9, %13 : vector<8x10xf32>
    %c0_9 = arith.constant 0 : index
    %c0_10 = arith.constant 0 : index
    %15 = vector.load %arg6[%c0_9, %c0_10] : memref<8x10xf32, #tpu.memory_space<vmem>>, vector<8x10xf32>
    tpu.vector_store %arg6[%c0_9, %c0_10], %14 {strides = array<i32>} : memref<8x10xf32, #tpu.memory_space<vmem>>, vector<8x10xf32>,
    return
  }
  func.func @transform_0(%arg0: i32) -> (i32, i32) {
    %c0_i32 = arith.constant 0 : i32
    %c0_i32_0 = arith.constant 0 : i32
    return %arg0, %c0_i32 : i32, i32
  }
  func.func @transform_1(%arg0: i32) -> (i32, i32) {
    %c0_i32 = arith.constant 0 : i32
    %c0_i32_0 = arith.constant 0 : i32
    return %arg0, %c0_i32 : i32, i32
  }
  func.func @transform_2(%arg0: i32) -> (i32, i32) {
    %c0_i32 = arith.constant 0 : i32
    %c0_i32_0 = arith.constant 0 : i32
    %c0_i32_1 = arith.constant 0 : i32
    return %c0_i32, %c0_i32_0 : i32, i32
  }
  func.func @transform_3(%arg0: i32) -> (i32, i32) {
    %c0_i32 = arith.constant 0 : i32
    %c0_i32_0 = arith.constant 0 : i32
    %c0_i32_1 = arith.constant 0 : i32
    return %c0_i32, %c0_i32_0 : i32, i32
  }
  func.func @transform_4(%arg0: i32) -> (i32, i32) {
    %c0_i32 = arith.constant 0 : i32
    %c0_i32_0 = arith.constant 0 : i32
    %c0_i32_1 = arith.constant 0 : i32
    return %c0_i32, %c0_i32_0 : i32, i32
  }
  func.func @transform_5(%arg0: i32) -> (i32, i32) {
    %c0_i32 = arith.constant 0 : i32
    %c0_i32_0 = arith.constant 0 : i32
    return %arg0, %c0_i32 : i32, i32
  }
}

</mosaic_0001>

<bundles_post_ra>
// kernel: two_linear.1
= control target key start
LH: loop header
LB: loop body
LE: loop exit
PB: predicated region body
PF: predicated region fallthrough
CT: control target
= control target key end

     0   :  { %10 = vsyncpa [#allocation3], 0  ;;  %s311_s0 = inlined_call_operand.hbm [shape: f32[8,10], index: 0, kind: input, shape index: {}]   ;;  %s312_s1 = inlined_call_operand.vmem [shape: f32[8,1], index: 1, kind: input, shape index: {}]   ;;  %s313_s2 = inlined_call_operand.vmem [shape: f32[10,10], index: 2, kind: input, shape index: {}]   ;;  %s314_s3 = inlined_call_operand.vmem [shape: f32[1,10], index: 3, kind: input, shape index: {}]   ;;  %s315_s4 = inlined_call_operand.vmem [shape: f32[1,10], index: 4, kind: input, shape index: {}]   ;;  %s316_s5 = inlined_call_operand.hbm [shape: f32[8,10], index: 5, kind: output, shape index: {}]  }
   0x1   :  { %11 = vsyncpa [#allocation4], 0  ;;  %s233_s18 = smov [#allocation2]   ;;  %s185_s22 = scalar_lea.hbm %s311_s0, 128 }
   0x2   :  { %s18_s19 = sshll.u32 %s233_s18, 4  ;;  %p186_p0 = scmp.ne.s32.totalorder %s311_s0, %s185_s22  ;;  %s19_s19 = int_to_ptr.vmem [resolvable:$true] %s18_s19 }
   0x3   :  { %p189_p1 = scmp.lt.u32.totalorder %s185_s22, %s311_s0 }
   0x5   :  { %p191_p2 = pnand %p189_p1, %p186_p0 }
   0x7   :  { %194 = shalt.err (!%p191_p2)
}
   0x8   :  { %s195_s27 = scalar_lea.vmem %s19_s19, 128  ;;  %p200_p4 = scmp.lt.s32.totalorder %s19_s19, %s19_s19 }
   0x9   :  { %p196_p3 = scmp.ne.s32.totalorder %s19_s19, %s195_s27  ;;  %p201_p5 = scmp.lt.s32.totalorder %s195_s27, %s195_s27 }
   0xb   :  { %p202_p6 = por %p201_p5, %p200_p4 }
   0xd   :  { %p203_p7 = pnand %p202_p6, %p196_p3 }
   0xf   :  { %206 = shalt.err (!%p203_p7)
}
  0x10   :  { %21 = dma.hbm_to_vmem [thread:$0]  %s311_s0, 128, %s19_s19, [#allocation3]  }
  0x11   :  { %229 = dma.done.wait [#allocation3], 128  }
  0x12   :  { %230 = vsyncadd [#allocation3], 4294967168  ;;  %v234_v0 = vmov 0.0|0.0   ;;  %vm235_vm0 = vmmov 0   ;;  %v236_v1 = vmov 0.0   ;;  %v237_v2 = vmov 0  }
  0x13   :  { %173 = vmatprep.subr.bf16.mxu0 %v234_v0  ;;  %170 = vmatprep.mubr.msk.f32.mxu0 %vm235_vm0, %v236_v1  ;;  %vm48_vm1 = vcmask 1041408   ;;  %v35_v3 = vld [vmem:[%s313_s2] sm:$0xff]  ;;  %v36_v4 = vld [vmem:[%s313_s2 + $0x8] sm:$0x3]  ;;  %vm238_vm2 = vmmov 1   ;;  %vm44_vm4 = vcmask 80896  }
  0x14   :  { %184 = vset.pattern.permute.xlu0 %v237_v2  ;;  %vm175_vm3 = vmpackc.low %vm48_vm1, %vm238_vm2  ;;  %v174_v5 = vpack.c.bf16 %v36_v4, %v35_v3  ;;  %v34_v6 = vld [vmem:[%s312_s1] sm:$0xff]  ;;  %s239_s1 = smov [#allocation5]  }
  0x15   :  { %v122_v7 = vmul.f32 %v34_v6, %v34_v6  ;;  %v33_v8 = vld [vmem:[#allocation2] sm:$0xff]  ;;  %s150_s13 = sshll.u32 %s239_s1, 4  ;;  %s151_s13 = int_to_ptr.vmem [resolvable:$true] %s150_s13 }
  0x16   :  { %176 = vmatpush3.bf16.msk.msra.mxu0 %vm175_vm3, %v174_v5  ;;  %v159_v10 = vld [vmem:[%s314_s3] ss:$0 sm:$0xff]  ;;  %s207_s14 = scalar_lea.vmem %s151_s13, 128  ;;  %p212_p9 = scmp.lt.s32.totalorder %s151_s13, %s151_s13 }
  0x17   :  { %125 = vperm.xlu0 %184, %v122_v7   ;;  %v162_v11 = vld [vmem:[%s315_s4] ss:$0 sm:$0xff]  ;;  %p208_p8 = scmp.ne.s32.totalorder %s151_s13, %s207_s14  ;;  %p213_p10 = scmp.lt.s32.totalorder %s207_s14, %s207_s14 }
  0x19   :  { %171 = vmatmul.mubr.msk.f32.vlgmr.msra.gmra.mrb[0].mxu0 %vm44_vm4, %v33_v8  ;;  %p214_p11 = por %p213_p10, %p212_p9 }
  0x1b   :  { %132 = vperm.xlu0 %184, %v34_v6   ;;  %p215_p12 = pnand %p214_p11, %p208_p8 }
  0x96   :  { %v126_v9 = vpop.permute.xlu0 %125 }
  0x9a   :  { %v133_v12 = vpop.permute.xlu0 %132 }
  0x9b   :  { %v141_v16 = vmul.f32 %v162_v11, %v133_v12 }
  0xec   :  { %v118_v13 = vpop.f32.mrb[0].mxu0 }
  0xed   :  { %v119_v14 = vadd.f32 %v159_v10, %v118_v13  ;;  %v172_v15 = vpop.f32.mrb[1].mxu0 }
  0xef   :  { %v128_v17 = vmul.f32 %v126_v9, %v119_v14 }
  0xf1   :  { %v142_v18 = vadd.f32 %v141_v16, %v128_v17 }
  0xf3   :  { %143 = vst.msk [vmem:[#allocation5] sm:$0xff] %vm44_vm4, %v142_v18 }
  0xf4   :  { %218 = shalt.err (!%p215_p12)
}
  0xf5   :  { %s219_s15 = scalar_lea.hbm %s316_s5, 128 }
  0xf6   :  { %p220_p13 = scmp.ne.s32.totalorder %s316_s5, %s219_s15  ;;  %p223_p0 = scmp.lt.u32.totalorder %s219_s15, %s316_s5 }
  0xf8   :  { %p225_p1 = pnand %p223_p0, %p220_p13 }
  0xfa   :  { %228 = shalt.err (!%p225_p1)
}
  0xfb   :  { %153 = dma.vmem_to_hbm [thread:$0]  %s151_s13, 128, %s316_s5, [#allocation4]  }
  0xfc   :  { %231 = dma.done.wait [#allocation4], 128  }
  0xfd   :  { %232 = vsyncadd [#allocation4], 4294967168 }
  0xfe   :  { %157 = vsyncpa [#allocation3], 1 }
  0xff   :  { %158 = vsyncpa [#allocation4], 1 }

</bundles_post_ra>
